<compile_context>
chip_gen: v5e
topology: v5e:2x2
jax: 0.10.0
libtpu: 0.0.40
codegen_flags: <defaults>
</compile_context>

<pallas_src>
import jax
import jax.numpy as jnp
from jax import lax
from jax.experimental import pallas as pl
from jax.experimental.pallas import tpu as pltpu


def _propagator_kernel(x_ref, w_ref, b_ref, o_ref):
    # y = relu(x @ W^T + b); W tile is (TN, D) in nn.Linear layout (no transpose).
    y = lax.dot_general(
        x_ref[...], w_ref[...],
        dimension_numbers=(((1,), (1,)), ((), ())),
        preferred_element_type=jnp.float32,
    )
    y = y + b_ref[...]
    o_ref[...] = jnp.maximum(y, 0.0).astype(o_ref.dtype)


def _propagator_res_kernel(x_ref, w_ref, b_ref, r_ref, o_ref):
    # y = relu(x @ W^T + b + res)
    y = lax.dot_general(
        x_ref[...], w_ref[...],
        dimension_numbers=(((1,), (1,)), ((), ())),
        preferred_element_type=jnp.float32,
    )
    y = y + b_ref[...] + r_ref[...]
    o_ref[...] = jnp.maximum(y, 0.0).astype(o_ref.dtype)


def propagator_forward(inputs, weight, bias, res=None, residual=False,
                       tile_m=512, tile_n=512, donate_res=False):
    """JAX/Pallas equivalent of Propagator.forward.

    inputs: (B, N, D) float32
    weight: (O, D) float32   (PyTorch nn.Linear layout, used as-is)
    bias:   (O,)   float32
    res:    (B, N, O) float32 or None
    donate_res: alias the residual HBM buffer to the output (only safe when the
                caller no longer needs `res` after the call).
    """
    B, N, D = inputs.shape
    O = weight.shape[0]
    M = B * N

    x2d = inputs.reshape(M, D)
    b2d = bias.reshape(1, O)

    # Tile sizes: use the full dim when it is small (always a legal block
    # shape); otherwise use sublane/lane-aligned tiles (TM % 8, TN % 128 == 0).
    tm = M if M <= tile_m else tile_m
    tn = O if O <= tile_n else tile_n

    # M outer, O inner -> x block index constant over the inner O sweep, so the
    # activation tile is DMA'd once per M tile; weight/bias are tiny and stream.
    grid = (pl.cdiv(M, tm), pl.cdiv(O, tn))

    x_spec = pl.BlockSpec((tm, D), lambda i, j: (i, 0))   # resident across O sweep
    w_spec = pl.BlockSpec((tn, D), lambda i, j: (j, 0))
    b_spec = pl.BlockSpec((1, tn), lambda i, j: (0, j))
    r_spec = pl.BlockSpec((tm, tn), lambda i, j: (i, j))
    o_spec = pl.BlockSpec((tm, tn), lambda i, j: (i, j))

    flops = 2 * M * D * O
    bytes_accessed = 4 * (M * D + O * D + O + M * O + (M * O if residual else 0))
    cost = pl.CostEstimate(flops=flops, transcendentals=0,
                           bytes_accessed=bytes_accessed)
    cparams = pltpu.CompilerParams(
        dimension_semantics=("parallel", "parallel"))

    out_shape = jax.ShapeDtypeStruct((M, O), inputs.dtype)

    if residual:
        assert res is not None
        res2d = res.reshape(M, O)
        out = pl.pallas_call(
            _propagator_res_kernel,
            out_shape=out_shape,
            grid=grid,
            in_specs=[x_spec, w_spec, b_spec, r_spec],
            out_specs=o_spec,
            compiler_params=cparams,
            cost_estimate=cost,
            # Optional: reuse the residual HBM buffer for the output.
            input_output_aliases=({3: 0} if donate_res else {}),
        )(x2d, weight, b2d, res2d)
    else:
        out = pl.pallas_call(
            _propagator_kernel,
            out_shape=out_shape,
            grid=grid,
            in_specs=[x_spec, w_spec, b_spec],
            out_specs=o_spec,
            compiler_params=cparams,
            cost_estimate=cost,
        )(x2d, weight, b2d)

    return out.reshape(B, N, O)


if __name__ == "__main__":
    key = jax.random.PRNGKey(0)
    keys = jax.random.split(key, 8)

    # --- small shape matching the module's forward: (B, N, D) -> (B, N, O) ---
    B, N, D, O = 2, 8, 32, 32
    inputs = jax.random.normal(keys[0], (B, N, D), dtype=jnp.float32)
    weight = jax.random.normal(keys[1], (O, D), dtype=jnp.float32) * 0.1
    bias = jax.random.normal(keys[2], (O,), dtype=jnp.float32) * 0.1
    res = jax.random.normal(keys[3], (B, N, O), dtype=jnp.float32)

    out0 = jax.block_until_ready(
        propagator_forward(inputs, weight, bias, residual=False))
    out1 = jax.block_until_ready(
        propagator_forward(inputs, weight, bias, res=res, residual=True))

    ref0 = jnp.maximum(
        inputs.reshape(B * N, D) @ weight.T + bias, 0.0).reshape(B, N, O)
    ref1 = jnp.maximum(
        inputs.reshape(B * N, D) @ weight.T + bias + res.reshape(B * N, O), 0.0
    ).reshape(B, N, O)

    assert out0.shape == (B, N, O) and out1.shape == (B, N, O)
    assert jnp.allclose(out0, ref0, atol=1e-3, rtol=1e-3)
    assert jnp.allclose(out1, ref1, atol=1e-3, rtol=1e-3)

    # --- second shape exercising the tiled/pipelined path:
    #     M = 1200 -> three 512-row M tiles (last one partial), grid > 1 ---
    B2, N2, D2, O2 = 3, 400, 64, 160
    inputs2 = jax.random.normal(keys[4], (B2, N2, D2), dtype=jnp.float32)
    weight2 = jax.random.normal(keys[5], (O2, D2), dtype=jnp.float32) * 0.1
    bias2 = jax.random.normal(keys[6], (O2,), dtype=jnp.float32) * 0.1
    res2 = jax.random.normal(keys[7], (B2, N2, O2), dtype=jnp.float32)

    out2 = jax.block_until_ready(
        propagator_forward(inputs2, weight2, bias2, res=res2, residual=True))
    ref2 = jnp.maximum(
        inputs2.reshape(B2 * N2, D2) @ weight2.T + bias2
        + res2.reshape(B2 * N2, O2), 0.0).reshape(B2, N2, O2)
    assert jnp.allclose(out2, ref2, atol=1e-3, rtol=1e-3)

    print("KERNEL_OK")
</pallas_src>

<mosaic_0001>
module attributes {stable_mosaic.version = 11 : i64} {
  func.func @_propagator_kernel(%arg0: i32, %arg1: i32, %arg2: memref<16x32xf32, #tpu.memory_space<vmem>>, %arg3: memref<32x32xf32, #tpu.memory_space<vmem>>, %arg4: memref<1x32xf32, #tpu.memory_space<vmem>>, %arg5: memref<16x32xf32, #tpu.memory_space<vmem>>) attributes {dimension_semantics = [#tpu.dimension_semantics<parallel>, #tpu.dimension_semantics<parallel>], iteration_bounds = array<i64: 1, 1>, scalar_prefetch = 0 : i64, scratch_operands = 0 : i64, tpu.core_type = #tpu.core_type<tc>, window_params = [{transform_indices = @transform_0, window_bounds = array<i64: 16, 32>}, {transform_indices = @transform_1, window_bounds = array<i64: 32, 32>}, {transform_indices = @transform_2, window_bounds = array<i64: 1, 32>}, {transform_indices = @transform_3, window_bounds = array<i64: 16, 32>}]} {
    %c0 = arith.constant 0 : index
    %c0_0 = arith.constant 0 : index
    %0 = vector.load %arg2[%c0, %c0_0] : memref<16x32xf32, #tpu.memory_space<vmem>>, vector<16x32xf32>
    %c0_1 = arith.constant 0 : index
    %c0_2 = arith.constant 0 : index
    %1 = vector.load %arg3[%c0_1, %c0_2] : memref<32x32xf32, #tpu.memory_space<vmem>>, vector<32x32xf32>
    %cst = arith.constant dense<0.000000e+00> : vector<16x32xf32>
    %2 = tpu.matmul %0, %1, %cst {dimension_numbers = #tpu.dot_dimension_numbers<[1], [1], [0], [0], [0, 0, 1, 0], [], []>} : vector<16x32xf32>, vector<32x32xf32>, vector<16x32xf32> -> vector<16x32xf32>
    %c0_3 = arith.constant 0 : index
    %c0_4 = arith.constant 0 : index
    %3 = vector.load %arg4[%c0_3, %c0_4] : memref<1x32xf32, #tpu.memory_space<vmem>>, vector<1x32xf32>
    %4 = vector.broadcast %3 : vector<1x32xf32> to vector<16x32xf32>
    %5 = arith.addf %2, %4 : vector<16x32xf32>
    %cst_5 = arith.constant 0.000000e+00 : f32
    %6 = vector.broadcast %cst_5 : f32 to vector<16x32xf32>
    %7 = arith.maximumf %5, %6 : vector<16x32xf32>
    %c0_6 = arith.constant 0 : index
    %c0_7 = arith.constant 0 : index
    %8 = vector.load %arg5[%c0_6, %c0_7] : memref<16x32xf32, #tpu.memory_space<vmem>>, vector<16x32xf32>
    tpu.vector_store %arg5[%c0_6, %c0_7], %7 {strides = array<i32>} : memref<16x32xf32, #tpu.memory_space<vmem>>, vector<16x32xf32>,
    return
  }
  func.func @transform_0(%arg0: i32, %arg1: i32) -> (i32, i32) {
    %c0_i32 = arith.constant 0 : i32
    %c0_i32_0 = arith.constant 0 : i32
    return %arg0, %c0_i32 : i32, i32
  }
  func.func @transform_1(%arg0: i32, %arg1: i32) -> (i32, i32) {
    %c0_i32 = arith.constant 0 : i32
    %c0_i32_0 = arith.constant 0 : i32
    return %arg1, %c0_i32 : i32, i32
  }
  func.func @transform_2(%arg0: i32, %arg1: i32) -> (i32, i32) {
    %c0_i32 = arith.constant 0 : i32
    %c0_i32_0 = arith.constant 0 : i32
    return %c0_i32, %arg1 : i32, i32
  }
  func.func @transform_3(%arg0: i32, %arg1: i32) -> (i32, i32) {
    %c0_i32 = arith.constant 0 : i32
    return %arg0, %arg1 : i32, i32
  }
}

</mosaic_0001>

<bundles_post_ra>
// kernel: tpu_custom_call.1
= control target key start
LH: loop header
LB: loop body
LE: loop exit
PB: predicated region body
PF: predicated region fallthrough
CT: control target
= control target key end

     0   :  { %8 = vsyncpa [#allocation3], 0  ;;  %s275_s0 = inlined_call_operand.hbm [shape: f32[16,32], index: 0, kind: input, shape index: {}]   ;;  %s276_s1 = inlined_call_operand.hbm [shape: f32[32,32], index: 1, kind: input, shape index: {}]   ;;  %s277_s2 = inlined_call_operand.vmem [shape: f32[1,32], index: 2, kind: input, shape index: {}]   ;;  %s278_s3 = inlined_call_operand.hbm [shape: f32[16,32], index: 3, kind: output, shape index: {}]  }
   0x1   :  { %9 = vsyncpa [#allocation6], 0 }
   0x2   :  { %10 = vsyncpa [#allocation4], 0  ;;  %s15_s14 = sshll.u32 %s275_s0, 4  ;;  %s217_s15 = smov [#allocation2]   ;;  %s16_s14 = int_to_ptr.hbm [resolvable:$true] %s15_s14 }
   0x3   :  { %s17_s16 = sshll.u32 %s217_s15, 4  ;;  %s28_s19 = sshll.u32 %s276_s1, 4  ;;  %s18_s16 = int_to_ptr.vmem [resolvable:$true] %s17_s16  ;;  %s29_s19 = int_to_ptr.hbm [resolvable:$true] %s28_s19 }
   0x4   :  { %s218_s20 = smov 128   ;;  %s219_s21 = smov 8  }
   0x5   :  { %23 = dma.hbm_to_vmem [thread:$0]  %s16_s14, 256, %s18_s16, [#allocation3], %s218_s20, %s218_s20, %s219_s21  }
   0x6   :  { %s220_s22 = smov [#allocation5]  }
   0x7   :  { %s30_s23 = sshll.u32 %s220_s22, 4  ;;  %s31_s23 = int_to_ptr.vmem [resolvable:$true] %s30_s23 }
   0x8   :  { %36 = dma.hbm_to_vmem [thread:$0]  %s29_s19, 512, %s31_s23, [#allocation6], %s218_s20, %s218_s20, %s219_s21  }
   0x9   :  { %211 = dma.done.wait [#allocation3], 256  }
   0xa   :  { %212 = vsyncadd [#allocation3], 4294967040 }
   0xb   :  { %213 = dma.done.wait [#allocation6], 512  }
   0xc   :  { %214 = vsyncadd [#allocation6], 4294966784  ;;  %vm57_vm0 = vcmask 261120   ;;  %v52_v0 = vld [vmem:[#allocation5 + $0x18] sm:$0xff]  ;;  %v51_v1 = vld [vmem:[#allocation5 + $0x10] sm:$0xff]  ;;  %s221_s24 = smov [#allocation7]  }
   0xd   :  { %123 = vmatpush.xpose.msk.msra.mxu0 %vm57_vm0, %v52_v0  ;;  %129 = vmatpush.xpose.msk.msra.mxu1 %vm57_vm0, %v52_v0  ;;  %v50_v2 = vld [vmem:[#allocation5 + $0x8] sm:$0xff]  ;;  %v49_v3 = vld [vmem:[#allocation5] sm:$0xff]  ;;  %v47_v4 = vld [vmem:[#allocation2] sm:$0xff]  ;;  %s107_s25 = sshll.u32 %s221_s24, 4  ;;  %s109_s28 = sshll.u32 %s278_s3, 4  ;;  %s108_s25 = int_to_ptr.vmem [resolvable:$true] %s107_s25  ;;  %s110_s28 = int_to_ptr.hbm [resolvable:$true] %s109_s28 }
   0xe   :  { %v48_v5 = vld [vmem:[#allocation2 + $0x8] sm:$0xff]  ;;  %v138_v6 = vld [vmem:[%s277_s2] ss:$0 sm:$0xff] }
  0x11   :  { %124 = vmatpush.xpose.msk.msra.mxu0 %vm57_vm0, %v51_v1  ;;  %130 = vmatpush.xpose.msk.msra.mxu1 %vm57_vm0, %v51_v1 }
  0x15   :  { %125 = vmatpush.xpose.msk.msra.mxu0 %vm57_vm0, %v50_v2  ;;  %131 = vmatpush.xpose.msk.msra.mxu1 %vm57_vm0, %v50_v2 }
  0x19   :  { %126 = vmatpush.xpose.msk.msra.mxu0 %vm57_vm0, %v49_v3  ;;  %132 = vmatpush.xpose.msk.msra.mxu1 %vm57_vm0, %v49_v3 }
  0x1c   :  { %127 = vmatmul.msk.f32.vlgmr.msra.gmra.mxu0 %vm57_vm0, %v47_v4  ;;  %128 = vmatmul.msk.f32.vlgmr.msra.gmra.mxu1 %vm57_vm0, %v48_v5 }
  0x99   :  { %v93_v7 = vpop.f32.mrf.mxu0  ;;  %v96_v8 = vpop.f32.mrf.mxu1 }
  0x9a   :  { %v94_v9 = vadd.f32 %v138_v6, %v93_v7  ;;  %v97_v10 = vadd.f32 %v138_v6, %v96_v8 }
  0x9c   :  { %v99_v11 = vmax.f32 %v94_v9, 0.0  ;;  %v100_v12 = vmax.f32 %v97_v10, 0.0 }
  0x9e   :  { %101 = vst.msk [vmem:[#allocation7] sm:$0xff] %vm57_vm0, %v99_v11 }
  0x9f   :  { %102 = vst.msk [vmem:[#allocation7 + $0x8] sm:$0xff] %vm57_vm0, %v100_v12 }
  0xa0   :  { %115 = dma.vmem_to_hbm [thread:$0]  %s108_s25, 256, %s110_s28, [#allocation4], %s218_s20, %s218_s20, %s219_s21  }
  0xa1   :  { %215 = dma.done.wait [#allocation4], 256  }
  0xa2   :  { %216 = vsyncadd [#allocation4], 4294967040 }
  0xa3   :  { %120 = vsyncpa [#allocation3], 1 }
  0xa4   :  { %121 = vsyncpa [#allocation6], 1 }
  0xa5   :  { %122 = vsyncpa [#allocation4], 1 }

</bundles_post_ra>
